<compile_context>
chip_gen: v6e
topology: v6e:2x2x1
jax: 0.10.0
libtpu: 0.0.40
codegen_flags: <defaults>
</compile_context>

<pallas_src>
import functools

import jax
import jax.numpy as jnp
from jax.experimental import pallas as pl
from jax.experimental.pallas import tpu as pltpu


def _fused_kernel(x_ref, o_ref, acc_ref, *, n_x_tiles, inv_n_feat):
    """One grid step over an (N, TF) column tile of the flattened output.

    Steps j <  n_x_tiles : reduce the x tile into acc and pass x through.
    Steps j >= n_x_tiles : fill the std-channel columns with mean(acc)/F.
    """
    j = pl.program_id(0)

    @pl.when(j == 0)
    def _init():
        acc_ref[...] = jnp.zeros_like(acc_ref)

    @pl.when(j < n_x_tiles)
    def _reduce_and_copy():
        xb = x_ref[...]                                        # (N, TF), native dtype
        x = xb.astype(jnp.float32)                             # cast in-kernel
        mu = jnp.mean(x, axis=0, keepdims=True)                # (1, TF) batch mean
        var = jnp.mean((x - mu) ** 2, axis=0, keepdims=True)   # biased variance
        std = jnp.sqrt(var + 1e-8)
        acc_ref[...] += std                                    # cheap VPU add, no x-lane reduce
        o_ref[...] = xb                                        # fused concat pass-through

    @pl.when(j >= n_x_tiles)
    def _fill_std_channel():
        # One cross-lane reduce per std-channel tile (usually just one tile);
        # negligible next to the DMA cost.
        scal = jnp.sum(acc_ref[...]) * inv_n_feat
        o_ref[...] = jnp.broadcast_to(scal, o_ref.shape).astype(o_ref.dtype)


def _choose_tile(dhw, n, itemsize, budget_bytes=6 * 1024 * 1024):
    """Largest multiple-of-128 divisor of dhw whose VMEM footprint
    (2 double-buffered input tiles + 2 output tiles of N rows each, plus the
    sublane-padded f32 accumulator) stays within ~budget_bytes — safe for the
    16 MiB scoped default on v5e and 32 MiB on v6e/v7x.  Returns None when
    dhw has no 128-aligned divisor (single-block fallback is used instead)."""
    if dhw % 128 != 0:
        return None
    per_col = 4 * n * itemsize + 8 * 4          # in+out double-buffers + padded acc
    max_tf = max(128, (budget_bytes // per_col) // 128 * 128)
    d = (min(dhw, max_tf) // 128) * 128
    while d >= 128:
        if dhw % d == 0:
            return d
        d -= 128
    return 128                                   # unreachable (128 | dhw), kept for safety


def _mbstd_whole(x2d, dhw):
    """Fallback for small / non-128-aligned D*H*W: one fused block."""
    N, F = x2d.shape
    F_out = F + dhw

    def kernel(x_ref, o_ref):
        xb = x_ref[...]
        x = xb.astype(jnp.float32)
        mu = jnp.mean(x, axis=0, keepdims=True)
        var = jnp.mean((x - mu) ** 2, axis=0, keepdims=True)
        std = jnp.sqrt(var + 1e-8)
        s = jnp.mean(std)
        o_ref[:, :F] = xb
        o_ref[:, F:] = jnp.broadcast_to(s, (N, dhw)).astype(o_ref.dtype)

    return pl.pallas_call(
        kernel,
        out_shape=jax.ShapeDtypeStruct((N, F_out), x2d.dtype),
        grid=(1,),
        in_specs=[pl.BlockSpec((N, F), lambda i: (0, 0))],
        out_specs=pl.BlockSpec((N, F_out), lambda i: (0, 0)),
        compiler_params=pltpu.CompilerParams(
            dimension_semantics=("arbitrary",)),
    )(x2d)


def minibatch_std_concat(x):
    """x: (N, C, D, H, W) -> (N, C+1, D, H, W), matching MinibatchStdConcatLayer."""
    N, C, D, H, W = x.shape
    dhw = D * H * W
    F = C * dhw
    F_out = (C + 1) * dhw
    itemsize = jnp.dtype(x.dtype).itemsize

    tf = _choose_tile(dhw, N, itemsize)
    if tf is None:
        # TODO(synk): huge inputs whose D*H*W is not a multiple of 128 would need
        # a masked-tail tiling; FutureGAN shapes are powers of two so this
        # single-block fallback only triggers for tiny / odd shapes.
        out2d = _mbstd_whole(x.reshape(N, F), dhw)
        return out2d.reshape(N, C + 1, D, H, W)

    n_x_tiles = F // tf          # tiles holding x columns
    n_tiles = F_out // tf        # + trailing std-channel tiles

    kernel = functools.partial(
        _fused_kernel, n_x_tiles=n_x_tiles, inv_n_feat=1.0 / float(F))
    cost = pl.CostEstimate(
        flops=4 * N * F,
        transcendentals=F,
        bytes_accessed=(N * F + N * F_out) * itemsize,
    )

    out2d = pl.pallas_call(
        kernel,
        out_shape=jax.ShapeDtypeStruct((N, F_out), x.dtype),
        grid=(n_tiles,),
        in_specs=[
            # Clamp the column block for the trailing std-channel steps; the
            # block index does not change there, so no extra DMA is issued.
            pl.BlockSpec((N, tf), lambda j: (0, jnp.minimum(j, n_x_tiles - 1))),
        ],
        out_specs=pl.BlockSpec((N, tf), lambda j: (0, j)),
        scratch_shapes=[
            pltpu.VMEM((1, tf), jnp.float32),   # running per-lane std sum
        ],
        compiler_params=pltpu.CompilerParams(
            dimension_semantics=("arbitrary",)),
        cost_estimate=cost,
    )(x.reshape(N, F))

    return out2d.reshape(N, C + 1, D, H, W)


def _reference(x):
    xf = x.astype(jnp.float32)
    y = xf - jnp.mean(xf, axis=0, keepdims=True)
    y = jnp.mean(y ** 2, axis=0, keepdims=True)
    y = jnp.sqrt(y + 1e-8)
    for axis in [1, 2, 3, 4]:
        y = jnp.mean(y, axis=axis, keepdims=True)
    y = jnp.broadcast_to(y, (x.shape[0], 1, x.shape[2], x.shape[3], x.shape[4]))
    return jnp.concatenate([x, y.astype(x.dtype)], axis=1)


if __name__ == "__main__":
    key = jax.random.PRNGKey(0)

    # Main tiled path: (N, C, D, H, W) with D*H*W a multiple of 128.
    x = jax.random.normal(key, (2, 4, 4, 8, 8), dtype=jnp.float32)
    out = jax.block_until_ready(minibatch_std_concat(x))
    ref = jax.block_until_ready(_reference(x))
    assert out.shape == (2, 5, 4, 8, 8), out.shape
    assert jnp.allclose(out, ref, atol=1e-5, rtol=1e-5), float(
        jnp.max(jnp.abs(out - ref)))

    # Fallback path: odd spatial size (D*H*W not 128-aligned).
    x2 = jax.random.normal(jax.random.PRNGKey(1), (2, 3, 2, 5, 5),
                           dtype=jnp.float32)
    out2 = jax.block_until_ready(minibatch_std_concat(x2))
    ref2 = jax.block_until_ready(_reference(x2))
    assert out2.shape == (2, 4, 2, 5, 5), out2.shape
    assert jnp.allclose(out2, ref2, atol=1e-5, rtol=1e-5), float(
        jnp.max(jnp.abs(out2 - ref2)))

    print("KERNEL_OK")
</pallas_src>

<mosaic_0001>
module attributes {stable_mosaic.version = 11 : i64} {
  func.func @_fused_kernel(%arg0: i32, %arg1: memref<2x256xf32, #tpu.memory_space<vmem>>, %arg2: memref<2x256xf32, #tpu.memory_space<vmem>>, %arg3: memref<1x256xf32, #tpu.memory_space<vmem>>) attributes {dimension_semantics = [#tpu.dimension_semantics<arbitrary>], iteration_bounds = array<i64: 5>, scalar_prefetch = 0 : i64, scratch_operands = 1 : i64, tpu.core_type = #tpu.core_type<tc>, window_params = [{transform_indices = @transform_0, window_bounds = array<i64: 2, 256>}, {transform_indices = @transform_1, window_bounds = array<i64: 2, 256>}]} {
    %c0_i32 = arith.constant 0 : i32
    %0 = arith.cmpi eq, %arg0, %c0_i32 : i32
    %1 = arith.extui %0 : i1 to i32
    %c0_i32_0 = arith.constant 0 : i32
    %2 = arith.cmpi ne, %1, %c0_i32_0 : i32
    scf.if %2 {
      %cst = arith.constant 0.000000e+00 : f32
      %9 = vector.broadcast %cst : f32 to vector<1x256xf32>
      %c0 = arith.constant 0 : index
      %c0_4 = arith.constant 0 : index
      %10 = vector.load %arg3[%c0, %c0_4] : memref<1x256xf32, #tpu.memory_space<vmem>>, vector<1x256xf32>
      tpu.vector_store %arg3[%c0, %c0_4], %9 {strides = array<i32>} : memref<1x256xf32, #tpu.memory_space<vmem>>, vector<1x256xf32>,
    } else {
    }
    %c4_i32 = arith.constant 4 : i32
    %3 = arith.cmpi slt, %arg0, %c4_i32 : i32
    %4 = arith.extui %3 : i1 to i32
    %c0_i32_1 = arith.constant 0 : i32
    %5 = arith.cmpi ne, %4, %c0_i32_1 : i32
    scf.if %5 {
      %c0 = arith.constant 0 : index
      %c0_4 = arith.constant 0 : index
      %9 = vector.load %arg1[%c0, %c0_4] : memref<2x256xf32, #tpu.memory_space<vmem>>, vector<2x256xf32>
      %cst = arith.constant dense<0.000000e+00> : vector<256xf32>
      %10 = vector.multi_reduction <add>, %9, %cst [0] : vector<2x256xf32> to vector<256xf32>
      %11 = vector.shape_cast %10 : vector<256xf32> to vector<1x256xf32>
      %cst_5 = arith.constant 2.000000e+00 : f32
      %12 = vector.broadcast %cst_5 : f32 to vector<1x256xf32>
      %13 = arith.divf %11, %12 : vector<1x256xf32>
      %14 = vector.broadcast %13 : vector<1x256xf32> to vector<2x256xf32>
      %15 = arith.subf %9, %14 : vector<2x256xf32>
      %16 = arith.mulf %15, %15 : vector<2x256xf32>
      %cst_6 = arith.constant dense<0.000000e+00> : vector<256xf32>
      %17 = vector.multi_reduction <add>, %16, %cst_6 [0] : vector<2x256xf32> to vector<256xf32>
      %18 = vector.shape_cast %17 : vector<256xf32> to vector<1x256xf32>
      %cst_7 = arith.constant 2.000000e+00 : f32
      %19 = vector.broadcast %cst_7 : f32 to vector<1x256xf32>
      %20 = arith.divf %18, %19 : vector<1x256xf32>
      %cst_8 = arith.constant 9.99999993E-9 : f32
      %21 = vector.broadcast %cst_8 : f32 to vector<1x256xf32>
      %22 = arith.addf %20, %21 : vector<1x256xf32>
      %23 = math.sqrt %22 : vector<1x256xf32>
      %c0_9 = arith.constant 0 : index
      %c0_10 = arith.constant 0 : index
      %24 = vector.load %arg3[%c0_9, %c0_10] : memref<1x256xf32, #tpu.memory_space<vmem>>, vector<1x256xf32>
      %25 = arith.addf %24, %23 : vector<1x256xf32>
      %c0_11 = arith.constant 0 : index
      %c0_12 = arith.constant 0 : index
      %26 = vector.load %arg3[%c0_11, %c0_12] : memref<1x256xf32, #tpu.memory_space<vmem>>, vector<1x256xf32>
      tpu.vector_store %arg3[%c0_11, %c0_12], %25 {strides = array<i32>} : memref<1x256xf32, #tpu.memory_space<vmem>>, vector<1x256xf32>,
      %c0_13 = arith.constant 0 : index
      %c0_14 = arith.constant 0 : index
      %27 = vector.load %arg2[%c0_13, %c0_14] : memref<2x256xf32, #tpu.memory_space<vmem>>, vector<2x256xf32>
      tpu.vector_store %arg2[%c0_13, %c0_14], %9 {strides = array<i32>} : memref<2x256xf32, #tpu.memory_space<vmem>>, vector<2x256xf32>,
    } else {
    }
    %c4_i32_2 = arith.constant 4 : i32
    %6 = arith.cmpi sge, %arg0, %c4_i32_2 : i32
    %7 = arith.extui %6 : i1 to i32
    %c0_i32_3 = arith.constant 0 : i32
    %8 = arith.cmpi ne, %7, %c0_i32_3 : i32
    scf.if %8 {
      %c0 = arith.constant 0 : index
      %c0_4 = arith.constant 0 : index
      %9 = vector.load %arg3[%c0, %c0_4] : memref<1x256xf32, #tpu.memory_space<vmem>>, vector<1x256xf32>
      %10 = vector.shape_cast %9 : vector<1x256xf32> to vector<1x1x256xf32>
      %cst = arith.constant dense<0.000000e+00> : vector<1xf32>
      %11 = vector.multi_reduction <add>, %10, %cst [1, 2] : vector<1x1x256xf32> to vector<1xf32>
      %12 = vector.shape_cast %11 : vector<1xf32> to vector<1x1x1xf32>
      %13 = vector.extract %12[0, 0, 0] : f32 from vector<1x1x1xf32>
      %cst_5 = arith.constant 9.765625E-4 : f32
      %14 = arith.mulf %13, %cst_5 : f32
      %15 = vector.broadcast %14 : f32 to vector<2x256xf32>
      %c0_6 = arith.constant 0 : index
      %c0_7 = arith.constant 0 : index
      %16 = vector.load %arg2[%c0_6, %c0_7] : memref<2x256xf32, #tpu.memory_space<vmem>>, vector<2x256xf32>
      tpu.vector_store %arg2[%c0_6, %c0_7], %15 {strides = array<i32>} : memref<2x256xf32, #tpu.memory_space<vmem>>, vector<2x256xf32>,
    } else {
    }
    return
  }
  func.func @transform_0(%arg0: i32) -> (i32, i32) {
    %c3_i32 = arith.constant 3 : i32
    %0 = arith.minsi %arg0, %c3_i32 : i32
    %c0_i32 = arith.constant 0 : i32
    %c0_i32_0 = arith.constant 0 : i32
    return %c0_i32, %0 : i32, i32
  }
  func.func @transform_1(%arg0: i32) -> (i32, i32) {
    %c0_i32 = arith.constant 0 : i32
    %c0_i32_0 = arith.constant 0 : i32
    return %c0_i32, %arg0 : i32, i32
  }
}

</mosaic_0001>

<bundles_post_ra>
// kernel: tpu_custom_call.1
= control target key start
LH: loop header
LB: loop body
LE: loop exit
PB: predicated region body
PF: predicated region fallthrough
CT: control target
= control target key end

     0   :  { %6 = vsyncpa [#allocation4], 0  ;;  %s805_s0 = inlined_call_operand.hbm [shape: f32[2,1024], index: 0, kind: input, shape index: {}]   ;;  %s806_s1 = inlined_call_operand.hbm [shape: f32[2,1280], index: 1, kind: output, shape index: {}]  }
   0x1   :  { %8 = vsyncpa [#allocation4 + $0x1], 0 }
   0x2   :  { %9 = vsyncpa [#allocation5], 0 }
   0x3   :  { %11 = vsyncpa [#allocation5 + $0x1], 0  ;;  %s616_s6 = smov 0   ;;  %s618_s7 = smov 0  }
   0x4   :  { %s620_s8 = smov 0   ;;  %s622_s9 = smov 0  }
   0x5   :  { %s624_s10 = smov 0   ;;  %s626_s11 = smov 0  }
   0x6   :  { %s628_s12 = smov 0  }
   0x7 LB: > { %s650_s13 = sadd.s32 4294967295, %s599_s12   ;;  %s385_s14 = sadd.s32 4294967294, %s599_s12   ;;  %s599_s12 = sphi %s628_s12, %s825_s12   ;;  %s595_s11 = sphi %s626_s11, %s824_s11   ;;  %s591_s10 = sphi %s624_s10, %s823_s10   ;;  %s587_s9 = sphi %s622_s9, %s822_s9   ;;  %s583_s8 = sphi %s620_s8, %s821_s8   ;;  %s579_s7 = sphi %s618_s7, %s820_s7   ;;  %s575_s6 = sphi %s616_s6, %s819_s6  }
   0x8   : > { %s654_s15 = sadd.s32 1, %s599_s12   ;;  %p21_p0 = scmp.lt.s32.totalorder %s599_s12, 3 }
   0x9   : > { %p23_p1 = scmp.lt.s32.totalorder %s654_s15, 3  ;;  %s28_s16 = sadd.s32 1, %s595_s11 }
   0xa   : > { %s22_s17 = scalar_select %p21_p0, %s599_s12, 3 }
   0xb   : > { %s24_s18 = scalar_select %p23_p1, %s654_s15, 3 }
   0xc   : > { %p35_p2 = scmp.ne.s32.totalorder %s595_s11, %s591_s10  ;;  %p36_p3 = scmp.eq.s32.totalorder %s599_s12, 0 }
   0xd   : > { %s25_s19 = ssub.s32 %s22_s17, %s24_s18  ;;  %p41_p4 = scmp.ne.s32.totalorder %s591_s10, %s587_s9 }
   0xe   : > { %p26_p5 = scmp.eq.s32.totalorder %s25_s19, 0  ;;  %p665_p6 = por %p36_p3, %p35_p2 }
   0xf   : > { %p42_p7 = scmp.eq.s32.totalorder %s650_s13, 0  ;;  %s51_s21 = ssub.s32 %s599_s12, %s654_s15 }
  0x10   : > { %s673_s22 = scalar_select %p26_p5, %s595_s11, %s28_s16  }
  0x11   : > { %p675_p8 = por %p42_p7, %p41_p4  ;;  %p52_p9 = scmp.eq.s32.totalorder %s51_s21, 0 }
  0x12   : > { %s54_s24 = sadd.s32 1, %s583_s8  ;;  %p64_p10 = scmp.ne.s32.totalorder %s583_s8, %s579_s7 }
  0x13   : > { %s810_s23 = scalar_select %p675_p8, 1, 0 }
  0x14   : > { %s683_s25 = scalar_select %p52_p9, %s583_s8, %s54_s24  }
  0x15   : > { %p65_p11 = scmp.eq.s32.totalorder %s650_s13, 4  ;;  %p70_p12 = scmp.ne.s32.totalorder %s579_s7, %s575_s6 }
  0x16   : > { %p71_p13 = scmp.eq.s32.totalorder %s385_s14, 4  ;;  %p418_p1 = scmp.lt.s32.totalorder %s599_s12, 5 }
  0x17   : > { %p688_p0 = por %p65_p11, %p64_p10  ;;  %s91_s28 = sand.u32 1, %s595_s11  }
  0x18   : > { %p693_p2 = por %p71_p13, %p70_p12  ;;  %s388_s29 = sshll.u32 %s91_s28, 2 }
  0x19   : > { %s811_s26 = scalar_select %p688_p0, 1, 0 }
  0x1a   : > { %s812_s27 = scalar_select %p693_p2, 1, 0 }
  0x1b   : > { %s402_s30 = sshll.u32 %s22_s17, 6  ;;  %s95_s5 = scalar_lea.vmem [#allocation3], %s388_s29 }
  0x1c   : > { %s701_s4 = scalar_lea.hbm %s805_s0, %s402_s30  ;;  %s105_s9 = sshll.u32 %s95_s5, 4  ;;  %s703_s9 = int_to_ptr.vmem [resolvable:$true] %s105_s9 }
  0x1d   : > { %p707_p3 = pnand %p418_p1, %p665_p6  ;;  %s92_s16 = scalar_lea.sflag [#allocation4], %s91_s28 }
  0x1e   : > { %s483_s17 = scalar_lea.hbm %s701_s4, 64  ;;  %s488_s21 = scalar_lea.hbm %s805_s0, 256 }
  0x1f   : > { %p484_p7 = scmp.ne.s32.totalorder %s701_s4, %s483_s17  ;;  %p485_p9 = pneg %p707_p3 }
  0x20   : > { %p489_p6 = scmp.lt.s32.totalorder %s701_s4, %s805_s0  ;;  %p490_p12 = scmp.lt.s32.totalorder %s488_s21, %s483_s17 }
  0x21   : > { %p486_p10 = pnand %p485_p9, %p484_p7 }
  0x22   : > { %p491_p13 = por %p490_p12, %p489_p6 }
  0x23   : > { %p487_p11 = pneg %p486_p10 }
  0x25   : > { %p492_p1 = pnand %p491_p13, %p487_p11 }
  0x27   : > { %495 = shalt.err (!%p492_p1)
}
  0x28   : > { %s496_s28 = scalar_lea.vmem %s703_s9, 64  ;;  %s601_s29 = smov [#allocation3]  }
  0x29   : > { %p497_p4 = scmp.ne.s32.totalorder %s703_s9, %s496_s28  ;;  %s501_s30 = sshll.u32 %s601_s29, 4  ;;  %s502_s30 = int_to_ptr.vmem [resolvable:$false] %s501_s30 }
  0x2a   : > { %s503_s2 = scalar_lea.vmem %s502_s30, 128  ;;  %p504_p10 = scmp.lt.s32.totalorder %s703_s9, %s502_s30 }
  0x2b   : > { %p499_p5 = pnand %p497_p4, %p485_p9  ;;  %p505_p2 = scmp.lt.s32.totalorder %s503_s2, %s496_s28 }
  0x2d   : > { %p500_p7 = pneg %p499_p5  ;;  %p506_p0 = por %p505_p2, %p504_p10 }
  0x2f   : > { %p507_p8 = pnand %p506_p0, %p500_p7 }
  0x31   : > { %510 = shalt.err (!%p507_p8)
}
  0x32   : > { %413 = dma.hbm_to_vmem [thread:$0]  (!%p707_p3), %s701_s4, 64, %s703_s9, %s92_s16  }
  0x33   : > { %p814_p11 = scmp.lt.s32.totalorder %s599_s12, 6  ;;  %p815_p6 = scmp.ge.s32.totalorder %s599_s12, 1 }
  0x35   : > { %p111_p4 = pnand %p815_p6, %p814_p11 }
  0x36   : > { %s116_s3 = sand.u32 (!%p111_p4), 1, %s591_s10   ;;  %p816_p2 = scmp.ne.s32.totalorder (!%p111_p4), %s810_s23, 0 }
  0x37   : > { %114 = sbr.rel (%p111_p4) target bundleno = 407 (0x197), region = 24  ;;  %s392_s5 = sshll.u32 (!%p111_p4), %s116_s3, 2 }
  0x38   : > { %s117_s17 = scalar_lea.sflag (!%p111_p4), [#allocation4], %s116_s3  ;;  %s120_s18 = scalar_lea.vmem (!%p111_p4), [#allocation3], %s392_s5 }
  0x3c   : > { %566 = dma.done.wait (%p816_p2), %s117_s17, 64  }
  0x3d   : > { %568 = vsyncadd (%p816_p2), %s117_s17, 4294967232  ;;  %s136_s14 = sand.u32 1, %s579_s7   ;;  %p394_p8 = scmp.ne.s32.totalorder %s650_s13, 0 }
  0x3e   : > { %s393_s4 = sshll.u32 %s136_s14, 2 }
  0x3f   : > { %s743_s9 = scalar_lea.vmem [#allocation6], %s393_s4  ;;  %146 = sbr.rel (%p394_p8) target bundleno = 72 (0x48), region = 32 }
  0x44   : > { %v147_v0 = vlaneseq  ;;  %v602_v1 = vmov 0.0  }
  0x46   : > { %vm149_vm0 = vcmp.lt.s32.totalorder %v147_v0, 256 }
  0x47   : > { %151 = vst.msk [vmem:[#allocation2] sm:$0x3] %vm149_vm0, %v602_v1 }
  0x48 PF: > { %p395_p0 = scmp.ge.s32.totalorder %s650_s13, 4 }
  0x4a   : > { %155 = sbr.rel (%p395_p0) target bundleno = 161 (0xa1), region = 36 }
  0x4f   : > { %v156_v2 = vld [vmem:[%s120_s18] sm:$0xf]  ;;  %v161_v3 = vlaneseq  ;;  %v603_v4 = vmov 1983009808   ;;  %vm168_vm1 = vcmask 1041408  }
  0x50   : > { %v159_v5 = vunpack.c.l.s4 %v603_v4  ;;  %267 = vst [vmem:[%s743_s9] sm:$0xf] %v156_v2  ;;  %v604_v51 = vmov 1966171168   ;;  %v242_v4 = vld [vmem:[#allocation2] sm:$0x3] }
  0x51   : > { %v749_v6 = vshrl.u32 %v161_v3, 7  ;;  %v247_v52 = vunpack.c.l.s4 %v604_v51  ;;  %vm264_vm6 = vcmp.lt.s32.totalorder %v161_v3, 256 }
  0x52   : > { %v160_v7 = vunpack.c.0.s8 %v159_v5 }
  0x53   : > { %v248_v56 = vunpack.c.0.s8 %v247_v52 }
  0x54   : > { %v163_v8 = vsub.s32 %v160_v7, %v749_v6 }
  0x55   : > { %v251_v63 = vsub.s32 %v248_v56, %v749_v6 }
  0x56   : > { %v164_v9 = vrot.slane %v156_v2, %v163_v8 }
  0x58   : > { %v165_v10 = vcombine.high %v164_v9, %v164_v9  ;;  %v169_v11 = vsel %vm168_vm1, %v164_v9, 0.0 }
  0x59   : > { %v170_v12 = vrot.slane %v169_v11, 4 }
  0x5a   : > { %v176_v13 = vsel %vm168_vm1, %v165_v10, 0.0 }
  0x5b   : > { %v171_v14 = vadd.f32 %v170_v12, %v169_v11  ;;  %v177_v15 = vrot.slane %v176_v13, 4 }
  0x5d   : > { %v172_v16 = vrot.slane %v171_v14, 2  ;;  %v178_v17 = vadd.f32 %v177_v15, %v176_v13 }
  0x5f   : > { %v173_v18 = vadd.f32 %v172_v16, %v171_v14  ;;  %v179_v19 = vrot.slane %v178_v17, 2 }
  0x61   : > { %v174_v20 = vrot.slane %v173_v18, 1  ;;  %v180_v21 = vadd.f32 %v179_v19, %v178_v17 }
  0x63   : > { %v175_v22 = vadd.f32 %v174_v20, %v173_v18  ;;  %v181_v23 = vrot.slane %v180_v21, 1 }
  0x65   : > { %v182_v24 = vadd.f32 %v181_v23, %v180_v21  ;;  %v184_v25 = vmul.f32 0.5, %v175_v22 }
  0x67   : > { %v185_v26 = vmul.f32 0.5, %v182_v24 }
  0x69   : > { %v188_v27 = vcombine.low %v184_v25, %v185_v26 }
  0x6b   : > { %v195_v28 = vrot.slane %v188_v27, %v163_v8 }
  0x6d   : > { %v197_v29 = vsub.f32 %v156_v2, %v195_v28 }
  0x6f   : > { %v198_v30 = vmul.f32 %v197_v29, %v197_v29 }
  0x71   : > { %v206_v31 = vrot.slane %v198_v30, %v163_v8 }
  0x73   : > { %v207_v32 = vcombine.high %v206_v31, %v206_v31  ;;  %v210_v33 = vsel %vm168_vm1, %v206_v31, 0.0 }
  0x74   : > { %v211_v34 = vrot.slane %v210_v33, 4 }
  0x75   : > { %v217_v35 = vsel %vm168_vm1, %v207_v32, 0.0 }
  0x76   : > { %v212_v36 = vadd.f32 %v211_v34, %v210_v33  ;;  %v218_v37 = vrot.slane %v217_v35, 4 }
  0x78   : > { %v213_v38 = vrot.slane %v212_v36, 2  ;;  %v219_v39 = vadd.f32 %v218_v37, %v217_v35 }
  0x7a   : > { %v214_v40 = vadd.f32 %v213_v38, %v212_v36  ;;  %v220_v41 = vrot.slane %v219_v39, 2 }
  0x7c   : > { %v215_v42 = vrot.slane %v214_v40, 1  ;;  %v221_v43 = vadd.f32 %v220_v41, %v219_v39 }
  0x7e   : > { %v216_v44 = vadd.f32 %v215_v42, %v214_v40  ;;  %v222_v45 = vrot.slane %v221_v43, 1 }
  0x80   : > { %v223_v46 = vadd.f32 %v222_v45, %v221_v43  ;;  %v224_v47 = vmul.f32 0.5, %v216_v44 }
  0x82   : > { %v225_v48 = vmul.f32 0.5, %v223_v46  ;;  %v226_v49 = vadd.f32 1e-08, %v224_v47 }
  0x84   : > { %v227_v50 = vadd.f32 1e-08, %v225_v48  ;;  %479 = vrsqrt.f32 %v226_v49  ;;  %vm230_vm2 = vcmp.eq.f32.partialorder %v226_v49, inf  ;;  %v233_v54 = vand.u32 2147483648, %v226_v49 }
  0x85   : > { %vm232_vm3 = vcmp.eq.f32.partialorder %v226_v49, 0.0 }
  0x86   : > { %481 = vrsqrt.f32 %v227_v50  ;;  %vm237_vm4 = vcmp.eq.f32.partialorder %v227_v50, inf  ;;  %v240_v58 = vand.u32 2147483648, %v227_v50  ;;  %vm239_vm5 = vcmp.eq.f32.partialorder %v227_v50, 0.0 }
  0x91   : > { %v480_v53 = vpop.eup %479 }
  0x92   : > { %v229_v55 = vmul.f32 %v480_v53, %v226_v49 }
  0x93   : > { %v482_v57 = vpop.eup %481 }
  0x94   : > { %v231_v59 = vsel %vm230_vm2, %v226_v49, %v229_v55  ;;  %v236_v60 = vmul.f32 %v482_v57, %v227_v50 }
  0x95   : > { %v234_v61 = vsel %vm232_vm3, %v233_v54, %v231_v59 }
  0x96   : > { %v238_v62 = vsel %vm237_vm4, %v227_v50, %v236_v60 }
  0x97   : > { %v241_v0 = vsel %vm239_vm5, %v240_v58, %v238_v62 }
  0x98   : > { %v245_v1 = vcombine.low %v234_v61, %v241_v0 }
  0x9a   : > { %v252_v2 = vrot.slane %v245_v1, %v251_v63 }
  0x9c   : > { %v259_v5 = vrot.slane %v252_v2, %v251_v63 }
  0x9e   : > { %v261_v7 = vadd.f32 %v259_v5, %v242_v4 }
  0xa0   : > { %266 = vst.msk [vmem:[#allocation2] sm:$0x3] %vm264_vm6, %v261_v7 }
  0xa1 PF: > { %p396_p3 = scmp.lt.s32.totalorder %s650_s13, 4 }
  0xa3   : > { %271 = sbr.rel (%p396_p3) target bundleno = 383 (0x17f), region = 40 }
  0xa8   : > { %v274_v8 = vlaneseq  ;;  %v272_v10 = vld [vmem:[#allocation2] sm:$0x3]  ;;  %vm284_vm7 = vcmask 1040384  }
  0xaa   : > { %v275_v9 = vshrl.u32 %v274_v8, 7 }
  0xac   : > { %v276_v11 = vsub.s32 0, %v275_v9  ;;  %v280_v12 = vsub.s32 1, %v275_v9 }
  0xae   : > { %v277_v6 = vrot.slane %v272_v10, %v276_v11  ;;  %v281_v13 = vrot.slane %v272_v10, %v280_v12 }
  0xb0   : > { %v285_v14 = vsel %vm284_vm7, %v277_v6, 0.0  ;;  %v286_v15 = vsel %vm284_vm7, %v281_v13, 0.0 }
  0xb1   : > { %v287_v16 = vadd.f32 %v286_v15, %v285_v14 }
  0xb3   : > { %288 = vadd.xlane.f32.xlu0 %v287_v16 }
 0x13c   : > { %v289_v3 = vpop.xlane.xlu0 %288 }
 0x13d   : > { %v290_v17 = vrot.slane %v289_v3, 4 }
 0x13f   : > { %v291_v18 = vadd.f32 %v290_v17, %v289_v3 }
 0x141   : > { %v292_v19 = vrot.slane %v291_v18, 2 }
 0x143   : > { %v293_v20 = vadd.f32 %v292_v19, %v291_v18 }
 0x145   : > { %v294_v21 = vrot.slane %v293_v20, 1 }
 0x147   : > { %v295_v22 = vadd.f32 %v294_v21, %v293_v20 }
 0x149   : > { %404 = vpush %v295_v22 }
 0x17a   : > { %s405_s23 = spop %404 }
 0x17b   : > { %s297_s16 = smul.f32 0.0009765625, %s405_s23 }
 0x17d   : > { %v298_v23 = vstv %s297_s16 }
 0x17e   : > { %299 = vst [vmem:[%s743_s9] sm:$0xf] %v298_v23 }
 0x17f PF: > { %s403_s19 = sshll.u32 %s650_s13, 6  ;;  %s315_s28 = sshll.u32 %s743_s9, 4  ;;  %s316_s28 = int_to_ptr.vmem [resolvable:$true] %s315_s28 }
 0x180   : > { %s313_s20 = scalar_lea.hbm %s806_s1, %s403_s19  ;;  %s301_s29 = scalar_lea.sflag [#allocation5], %s136_s14 }
 0x181   : > { %s511_s30 = scalar_lea.vmem %s316_s28, 64  ;;  %p817_p9 = scmp.ne.s32.totalorder %s811_s26, 0 }
 0x182   : > { %p512_p5 = scmp.ne.s32.totalorder %s316_s28, %s511_s30  ;;  %s605_s2 = smov [#allocation6]  }
 0x183   : > { %s515_s3 = sshll.u32 %s605_s2, 4  ;;  %s516_s3 = int_to_ptr.vmem [resolvable:$false] %s515_s3 }
 0x184   : > { %p513_p12 = pnand %p512_p5, %p817_p9  ;;  %s517_s5 = scalar_lea.vmem %s516_s3, 128 }
 0x185   : > { %p518_p1 = scmp.lt.s32.totalorder %s316_s28, %s516_s3  ;;  %p519_p7 = scmp.lt.s32.totalorder %s517_s5, %s511_s30 }
 0x186   : > { %p514_p13 = pneg %p513_p12 }
 0x187   : > { %p520_p10 = por %p519_p7, %p518_p1 }
 0x189   : > { %p521_p11 = pnand %p520_p10, %p514_p13 }
 0x18b   : > { %524 = shalt.err (!%p521_p11)
}
 0x18c   : > { %s525_s13 = scalar_lea.hbm %s313_s20, 64  ;;  %s529_s14 = scalar_lea.hbm %s806_s1, 320 }
 0x18d   : > { %p526_p6 = scmp.ne.s32.totalorder %s313_s20, %s525_s13  ;;  %p530_p8 = scmp.lt.s32.totalorder %s313_s20, %s806_s1 }
 0x18e   : > { %p531_p0 = scmp.lt.s32.totalorder %s529_s14, %s525_s13 }
 0x18f   : > { %p527_p4 = pnand %p526_p6, %p817_p9 }
 0x190   : > { %p532_p3 = por %p531_p0, %p530_p8 }
 0x191   : > { %p528_p2 = pneg %p527_p4 }
 0x193   : > { %p533_p5 = pnand %p532_p3, %p528_p2 }
 0x195   : > { %536 = shalt.err (!%p533_p5)
}
 0x196   : > { %408 = dma.vmem_to_hbm [thread:$0]  (%p817_p9), %s316_s28, 64, %s313_s20, %s301_s29  }
 0x197 PF: > { %p419_p12 = scmp.ge.s32.totalorder %s599_s12, 2  ;;  %s327_s23 = sand.u32 1, %s575_s6  }
 0x198   : > { %p818_p13 = scmp.ne.s32.totalorder %s812_s27, 0  ;;  %s328_s16 = scalar_lea.sflag [#allocation5], %s327_s23 }
 0x19a   : > { %p415_p1 = pnand %p419_p12, %p818_p13 }
 0x19c   : > { %p416_p7 = pneg %p415_p1 }
 0x19e   : > { %570 = dma.done.wait (%p416_p7), %s328_s16, 64  }
 0x19f   : > { %572 = vsyncadd (%p416_p7), %s328_s16, 4294967232  ;;  %p14_p9 = scmp.ge.s32.totalorder %s654_s15, 7   ;;  %s819_s6 = smov %s579_s7 }
 0x1a0   : > { %s820_s7 = smov %s583_s8  ;;  %s821_s8 = smov %s683_s25 }
 0x1a1   : > { %s822_s9 = smov %s591_s10  ;;  %s823_s10 = smov %s595_s11 }
 0x1a2   : > { %s824_s11 = smov %s673_s22  ;;  %s825_s12 = smov %s654_s15 }
 0x1a3   :  { %16 = sbr.rel (!%p14_p9) target bundleno = 7 (0x7), region = 81 }
 0x1a8   :  { %333 = vsyncpa [#allocation4], 1 }
 0x1a9   :  { %335 = vsyncpa [#allocation4 + $0x1], 1 }
 0x1aa   :  { %336 = vsyncpa [#allocation5], 1 }
 0x1ab   :  { %338 = vsyncpa [#allocation5 + $0x1], 1 }

</bundles_post_ra>
